<compile_context>
chip_gen: v7x
topology: tpu7x:2x2x1
jax: 0.10.0
libtpu: 0.0.40
codegen_flags: <defaults>
</compile_context>

<pallas_src>
import functools

import jax
import jax.numpy as jnp
from jax.experimental import pallas as pl
from jax.experimental.pallas import tpu as pltpu


def _lora_conv_kernel(a_ref, b_ref, w_ref, o_ref, *, scale):
    # a_ref: (tfo, r*kk)   b_ref: (r*kk, tcol)   w_ref/o_ref: (tfo, tcol)
    delta = jnp.dot(a_ref[...], b_ref[...], preferred_element_type=jnp.float32)
    o_ref[...] = (w_ref[...].astype(jnp.float32) + delta * scale).astype(o_ref.dtype)


_SUBLANE_FLOOR = {4: 8, 2: 16, 1: 32}   # packed sublane tile per itemsize
_COL_SPLIT = 2048                       # split fi*kk above this (multiple of 128)


def _round_up(x, m):
    return ((x + m - 1) // m) * m


def _round_down(x, m):
    return (x // m) * m


def _vmem_capacity_bytes():
    """Physical per-core VMEM; conservative 64 MiB (v7x) if the query fails."""
    cap = 64 * 1024 * 1024
    try:
        info = pltpu.get_tpu_info()
        got = int(getattr(info, "vmem_capacity_bytes", 0))
        if got > 0:
            cap = got
    except Exception:
        pass
    return max(32 * 1024 * 1024, min(cap, 128 * 1024 * 1024))


def _plan_tiles(fo, cols, rkk, w_itemsize, lora_itemsize):
    """Pick (tfo, tcol, vmem_limit) for the (fo, cols=fi*kh*kw) flattened view."""
    vmem_limit = _vmem_capacity_bytes()
    budget = int(vmem_limit * 0.55)       # headroom for Mosaic internal scratch
    row_floor = _SUBLANE_FLOOR.get(w_itemsize, 8)

    # Column tile: keep the output lane-dense; only split very wide rows.
    tcol = cols if cols <= _COL_SPLIT else _COL_SPLIT

    # Per-grid-step VMEM: double-buffered W-in / out / A blocks + B_big block
    # + f32 delta & f32 cast of the W tile (the temporaries the old formula missed).
    fixed = 2 * rkk * tcol * lora_itemsize
    per_row = 4 * tcol * w_itemsize + 2 * rkk * lora_itemsize + 2 * tcol * 4
    max_rows = max(row_floor, (budget - fixed) // max(per_row, 1))

    tfo = min(_round_down(max_rows, row_floor), _round_up(fo, row_floor))
    if fo > row_floor:
        # >= 2 roughly even row blocks so the "parallel" axis can be split
        # across v7x's two TensorCores (negligible cost on single-core chips).
        tfo = min(tfo, _round_up(pl.cdiv(fo, 2), row_floor))
    tfo = max(tfo, row_floor)
    if tfo >= fo:
        tfo = fo                          # full-extent block (exempt from /8 rule)
    return tfo, tcol, vmem_limit


def lora_conv_forward(W0, lora_A, lora_B, *, rank, alphas, enabled=True,
                      donate_w0=False):
    """Pallas implementation of LoraConvLayer.forward(W_0)."""
    if not enabled:
        return W0

    fo, fi, kh, kw = W0.shape
    r = lora_A.shape[1]
    assert rank == r, "rank argument must match lora_A.shape[1]"
    assert lora_A.shape == (fo, r, kh, kw)
    assert lora_B.shape == (r, fi, kh, kw)
    scale = rank / alphas                 # matches the PyTorch module (rank/alphas)
    kk = kh * kw
    cols = fi * kk
    rkk = r * kk

    # Large tensor: free, contiguous reshape only (column j = e*kk + p).
    W2 = W0.reshape(fo, cols)
    # Tiny tensors: A2[a, b*kk+p] = A[a,b,p] (free reshape).
    A2 = lora_A.reshape(fo, rkk)
    # Block-diagonal B: B_big[b*kk+p, e*kk+q] = B[b,e,p] * (p==q), so that
    # A2 @ B_big == einsum('abcd,becd->aecd') in the flattened layout.
    eye = jnp.eye(kk, dtype=lora_B.dtype)
    B_big = jnp.einsum("bep,pq->bpeq", lora_B.reshape(r, fi, kk), eye
                       ).reshape(rkk, cols)

    tfo, tcol, vmem_limit = _plan_tiles(
        fo, cols, rkk,
        jnp.dtype(W0.dtype).itemsize, jnp.dtype(lora_B.dtype).itemsize)
    grid = (pl.cdiv(fo, tfo), pl.cdiv(cols, tcol))

    kernel = functools.partial(_lora_conv_kernel, scale=scale)
    # TODO(synk): B_big could be single-buffered (pipeline_mode=pl.Buffered(1))
    # when the column axis is not split; its double-buffered footprint is
    # already accounted for in _plan_tiles, so this is a minor saving.
    out2 = pl.pallas_call(
        kernel,
        out_shape=jax.ShapeDtypeStruct((fo, cols), W0.dtype),
        grid=grid,
        in_specs=[
            pl.BlockSpec((tfo, rkk), lambda i, j: (i, 0)),    # A row tile (tiny)
            pl.BlockSpec((rkk, tcol), lambda i, j: (0, j)),   # B_big column block
            pl.BlockSpec((tfo, tcol), lambda i, j: (i, j)),   # W tile (lane-dense)
        ],
        out_specs=pl.BlockSpec((tfo, tcol), lambda i, j: (i, j)),
        compiler_params=pltpu.CompilerParams(
            dimension_semantics=("parallel", "parallel"),
            vmem_limit_bytes=vmem_limit),
        input_output_aliases={2: 0} if donate_w0 else {},
    )(A2, B_big, W2)

    # Free, contiguous reshape back to the conv-weight layout.
    return out2.reshape(fo, fi, kh, kw)


def lora_conv_reference(W0, lora_A, lora_B, *, rank, alphas, enabled=True):
    if not enabled:
        return W0
    scale = rank / alphas
    delta = jnp.einsum("abcd,becd->aecd",
                       lora_A.astype(jnp.float32), lora_B.astype(jnp.float32))
    return (W0.astype(jnp.float32) + delta * scale).astype(W0.dtype)


if __name__ == "__main__":
    # Module hyperparameters (small, consistent with a conv LoRA adapter).
    features_in, features_out, kernel_size = 16, 32, 3
    rank, alphas = 2, 1

    key = jax.random.PRNGKey(0)
    k_w, k_a, k_b, k_w2, k_a2, k_b2 = jax.random.split(key, 6)

    # Parameters as in __init__: lora_A ~ Normal(0,1), lora_B = zeros.
    lora_A = jax.random.normal(
        k_a, (features_out, rank, kernel_size, kernel_size), jnp.float32)
    lora_B0 = jnp.zeros((rank, features_in, kernel_size, kernel_size), jnp.float32)
    # Forward input: the base conv weight W_0.
    W0 = jax.random.normal(
        k_w, (features_out, features_in, kernel_size, kernel_size), jnp.float32)

    # enabled=True with a freshly-initialised adapter (lora_B == 0) -> out == W_0.
    out = jax.block_until_ready(
        lora_conv_forward(W0, lora_A, lora_B0, rank=rank, alphas=alphas,
                          enabled=True))
    ref = lora_conv_reference(W0, lora_A, lora_B0, rank=rank, alphas=alphas)
    assert jnp.allclose(out, ref, atol=1e-5, rtol=1e-5)

    # Non-zero lora_B exercises the matmul path numerically.
    lora_Bnz = jax.random.normal(
        k_b, (rank, features_in, kernel_size, kernel_size), jnp.float32)
    out_nz = jax.block_until_ready(
        lora_conv_forward(W0, lora_A, lora_Bnz, rank=rank, alphas=alphas,
                          enabled=True))
    ref_nz = lora_conv_reference(W0, lora_A, lora_Bnz, rank=rank, alphas=alphas)
    assert jnp.allclose(out_nz, ref_nz, atol=1e-4, rtol=1e-4)

    # Ragged fo (not a multiple of the chosen tile) exercises the cdiv grid path.
    fo_r, fi_r = 40, 8
    W0_r = jax.random.normal(k_w2, (fo_r, fi_r, kernel_size, kernel_size), jnp.float32)
    A_r = jax.random.normal(k_a2, (fo_r, rank, kernel_size, kernel_size), jnp.float32)
    B_r = jax.random.normal(k_b2, (rank, fi_r, kernel_size, kernel_size), jnp.float32)
    out_r = jax.block_until_ready(
        lora_conv_forward(W0_r, A_r, B_r, rank=rank, alphas=alphas, enabled=True))
    ref_r = lora_conv_reference(W0_r, A_r, B_r, rank=rank, alphas=alphas)
    assert jnp.allclose(out_r, ref_r, atol=1e-4, rtol=1e-4)

    # bf16 weights exercise the 16-row packed-sublane tile floor.
    out_bf = jax.block_until_ready(
        lora_conv_forward(W0.astype(jnp.bfloat16), lora_A.astype(jnp.bfloat16),
                          lora_Bnz.astype(jnp.bfloat16),
                          rank=rank, alphas=alphas, enabled=True))
    ref_bf = lora_conv_reference(W0.astype(jnp.bfloat16), lora_A.astype(jnp.bfloat16),
                                 lora_Bnz.astype(jnp.bfloat16),
                                 rank=rank, alphas=alphas)
    assert jnp.allclose(out_bf.astype(jnp.float32), ref_bf.astype(jnp.float32),
                        atol=5e-2, rtol=5e-2)

    # Disabled path (module default) is a pass-through, handled in the wrapper.
    assert jnp.array_equal(
        lora_conv_forward(W0, lora_A, lora_B0, rank=rank, alphas=alphas,
                          enabled=False), W0)

    print("KERNEL_OK")
</pallas_src>

<mosaic_0001>
module attributes {stable_mosaic.version = 11 : i64} {
  func.func @_lora_conv_kernel(%arg0: i32, %arg1: i32, %arg2: memref<16x18xf32, #tpu.memory_space<vmem>>, %arg3: memref<18x144xf32, #tpu.memory_space<vmem>>, %arg4: memref<16x144xf32, #tpu.memory_space<vmem>>, %arg5: memref<16x144xf32, #tpu.memory_space<vmem>>) attributes {dimension_semantics = [#tpu.dimension_semantics<parallel>, #tpu.dimension_semantics<parallel>], iteration_bounds = array<i64: 2, 1>, scalar_prefetch = 0 : i64, scratch_operands = 0 : i64, tpu.core_type = #tpu.core_type<tc>, window_params = [{transform_indices = @transform_0, window_bounds = array<i64: 16, 18>}, {transform_indices = @transform_1, window_bounds = array<i64: 18, 144>}, {transform_indices = @transform_2, window_bounds = array<i64: 16, 144>}, {transform_indices = @transform_3, window_bounds = array<i64: 16, 144>}]} {
    %c0 = arith.constant 0 : index
    %c0_0 = arith.constant 0 : index
    %0 = vector.load %arg2[%c0, %c0_0] : memref<16x18xf32, #tpu.memory_space<vmem>>, vector<16x18xf32>
    %c0_1 = arith.constant 0 : index
    %c0_2 = arith.constant 0 : index
    %1 = vector.load %arg3[%c0_1, %c0_2] : memref<18x144xf32, #tpu.memory_space<vmem>>, vector<18x144xf32>
    %cst = arith.constant dense<0.000000e+00> : vector<16x144xf32>
    %2 = tpu.matmul %0, %1, %cst {dimension_numbers = #tpu.dot_dimension_numbers<[1], [0], [0], [1], [0, 0, 1, 1], [], []>} : vector<16x18xf32>, vector<18x144xf32>, vector<16x144xf32> -> vector<16x144xf32>
    %c0_3 = arith.constant 0 : index
    %c0_4 = arith.constant 0 : index
    %3 = vector.load %arg4[%c0_3, %c0_4] : memref<16x144xf32, #tpu.memory_space<vmem>>, vector<16x144xf32>
    %cst_5 = arith.constant 2.000000e+00 : f32
    %4 = vector.broadcast %cst_5 : f32 to vector<16x144xf32>
    %5 = arith.mulf %2, %4 : vector<16x144xf32>
    %6 = arith.addf %3, %5 : vector<16x144xf32>
    %c0_6 = arith.constant 0 : index
    %c0_7 = arith.constant 0 : index
    %7 = vector.load %arg5[%c0_6, %c0_7] : memref<16x144xf32, #tpu.memory_space<vmem>>, vector<16x144xf32>
    tpu.vector_store %arg5[%c0_6, %c0_7], %6 {strides = array<i32>} : memref<16x144xf32, #tpu.memory_space<vmem>>, vector<16x144xf32>,
    return
  }
  func.func @transform_0(%arg0: i32, %arg1: i32) -> (i32, i32) {
    %c0_i32 = arith.constant 0 : i32
    %c0_i32_0 = arith.constant 0 : i32
    return %arg0, %c0_i32 : i32, i32
  }
  func.func @transform_1(%arg0: i32, %arg1: i32) -> (i32, i32) {
    %c0_i32 = arith.constant 0 : i32
    %c0_i32_0 = arith.constant 0 : i32
    return %c0_i32, %arg1 : i32, i32
  }
  func.func @transform_2(%arg0: i32, %arg1: i32) -> (i32, i32) {
    %c0_i32 = arith.constant 0 : i32
    return %arg0, %arg1 : i32, i32
  }
  func.func @transform_3(%arg0: i32, %arg1: i32) -> (i32, i32) {
    %c0_i32 = arith.constant 0 : i32
    return %arg0, %arg1 : i32, i32
  }
}

</mosaic_0001>

<bundles_post_ra>
// kernel: tpu_custom_call.1
= control target key start
LH: loop header
LB: loop body
LE: loop exit
PB: predicated region body
PF: predicated region fallthrough
CT: control target
= control target key end

     0   :  { %s1129_s0 = inlined_call_operand.hbm [shape: f32[32,18], index: 0, kind: input, shape index: {}]   ;;  %s1130_s1 = inlined_call_operand.hbm [shape: f32[18,144], index: 1, kind: input, shape index: {}]   ;;  %s1131_s2 = inlined_call_operand.hbm [shape: f32[32,144], index: 2, kind: input, shape index: {}]   ;;  %s1132_s3 = inlined_call_operand.hbm [shape: f32[32,144], index: 3, kind: output, shape index: {}]  }
   0x1   :  { %1137 = sst [smem:[#allocation13_spill]] %s1129_s0 }
   0x2   :  { %1138 = sst [smem:[#allocation14_spill]] %s1131_s2 }
   0x3   :  { %8 = vsyncpa [#allocation3], 0 }
   0x4   :  { %10 = vsyncpa [#allocation3 + $0x1], 0 }
   0x5   :  { %11 = vsyncpa [#allocation6], 0 }
   0x6   :  { %12 = vsyncpa [#allocation4], 0 }
   0x7   :  { %14 = vsyncpa [#allocation4 + $0x1], 0  ;;  %s862_s12 = smov 0   ;;  %s864_s13 = smov 0  }
   0x8   :  { %s866_s14 = smov 0   ;;  %s868_s15 = smov 0  }
   0x9   :  { %s870_s16 = smov 0   ;;  %s872_s17 = smov 0  }
   0xa LB: > { %s32_s18 = sadd.s32 1, %s825_s16  ;;  %s39_s19 = sadd.s32 1, %s817_s14  ;;  %s829_s17 = sphi %s872_s17, %s20_s17   ;;  %s825_s16 = sphi %s870_s16, %s1158_s16   ;;  %s821_s15 = sphi %s868_s15, %s1157_s15   ;;  %s817_s14 = sphi %s866_s14, %s1156_s14   ;;  %s813_s13 = sphi %s864_s13, %s1155_s13   ;;  %s809_s12 = sphi %s862_s12, %s1154_s12  }
   0xb   : > { %p34_p0 = scmp.ge.s32.totalorder %s32_s18, 2  ;;  %p46_p1 = scmp.ne.s32.totalorder %s817_s14, %s813_s13 }
   0xc   : > { %p47_p2 = scmp.eq.s32.totalorder %s829_s17, 0  ;;  %p592_p5 = scmp.lt.s32.totalorder %s829_s17, 2 }
   0xd   : > { %s1160_s18 = smov (%p34_p0, %s32_s18), 0  ;;  %s174_s21 = sand.u32 1, %s829_s17  }
   0xe   : > { %p48_p4 = por %p47_p2, %p46_p1  ;;  %s36_s20 = ssub.s32 %s825_s16, %s1160_s18 }
   0xf   : > { %p37_p6 = scmp.eq.s32.totalorder %s36_s20, 0  ;;  %s176_s22 = sand.u32 1, %s817_s14  }
  0x10   : > { %s553_s23 = sshll.u32 %s825_s16, 8  ;;  %s531_s25 = sshll.u32 %s176_s22, 4 }
  0x11   : > { %s910_s24 = scalar_select %p37_p6, %s817_s14, %s39_s19  }
  0x12   : > { %s1139_s0 = sld [smem:[#allocation13_spill]]  ;;  %p917_p7 = pnand %p592_p5, %p48_p4 }
  0x13   : > { %s178_s30 = scalar_lea.vmem [#allocation2], %s531_s25  ;;  %s923_s5 = sshll.u32 %s176_s22, 5 }
  0x14   : > { %s185_s4 = sshll.u32 %s178_s30, 4  ;;  %s925_s6 = scalar_lea.sflag [#allocation3], %s174_s21  ;;  %s921_s4 = int_to_ptr.vmem [resolvable:$true] %s185_s4 }
  0x15   : > { %p653_p9 = pneg %p917_p7 }
  0x18   : > { %s915_s28 = scalar_lea.hbm %s1139_s0, %s553_s23  ;;  %s656_s10 = scalar_lea.hbm %s1139_s0, 512 }
  0x19   : > { %s651_s7 = scalar_lea.hbm %s915_s28, 256  ;;  %p657_p12 = scmp.lt.u32.totalorder %s915_s28, %s1139_s0 }
  0x1a   : > { %p652_p8 = scmp.ne.s32.totalorder %s915_s28, %s651_s7  ;;  %p658_p13 = scmp.lt.u32.totalorder %s656_s10, %s651_s7 }
  0x1b   : > { %p660_p2 = scmp.lt.u32.totalorder %s651_s7, %s915_s28 }
  0x1c   : > { %p654_p10 = pnand %p653_p9, %p652_p8  ;;  %p659_p0 = por %p658_p13, %p657_p12 }
  0x1e   : > { %p655_p11 = pneg %p654_p10  ;;  %p661_p4 = por %p660_p2, %p659_p0 }
  0x20   : > { %p662_p5 = pnand %p661_p4, %p655_p11 }
  0x22   : > { %665 = shalt.err (!%p662_p5)
}
  0x23   : > { %s666_s20 = scalar_lea.vmem %s921_s4, 256  ;;  %s831_s21 = smov [#allocation2]  }
  0x24   : > { %p667_p6 = scmp.ne.s32.totalorder %s921_s4, %s666_s20  ;;  %s671_s22 = sshll.u32 %s831_s21, 4  ;;  %s672_s22 = int_to_ptr.vmem [resolvable:$false] %s671_s22 }
  0x25   : > { %s673_s23 = scalar_lea.vmem %s672_s22, 512  ;;  %p674_p3 = scmp.lt.s32.totalorder %s921_s4, %s672_s22 }
  0x26   : > { %p669_p8 = pnand %p667_p6, %p653_p9  ;;  %p675_p12 = scmp.lt.s32.totalorder %s673_s23, %s666_s20 }
  0x28   : > { %p670_p10 = pneg %p669_p8  ;;  %p676_p13 = por %p675_p12, %p674_p3 }
  0x2a   : > { %p677_p0 = pnand %p676_p13, %p670_p10 }
  0x2c   : > { %680 = shalt.err (!%p677_p0)
}
  0x2d   : > { %s832_s25 = smov 128   ;;  %s833_s26 = smov 8  }
  0x2e   : > { %583 = dma.hbm_to_vmem [thread:$0]  (!%p917_p7), %s915_s28, 256, %s921_s4, %s925_s6, %s832_s25, %s832_s25, %s833_s26  }
  0x2f   : > { %s954_s27 = sadd.s32 4294967295, %s829_s17   ;;  %s527_s30 = sadd.s32 4294967294, %s829_s17  }
  0x30   : > { %p52_p3 = scmp.ne.s32.totalorder %s813_s13, %s809_s12  ;;  %p1133_p11 = scmp.eq.s32.totalorder %s954_s27, 0 }
  0x31   : > { %p132_p2 = scmp.eq.s32.totalorder %s954_s27, 1  ;;  %p138_p4 = scmp.eq.s32.totalorder %s527_s30, 1 }
  0x32   : > { %p963_p5 = por %p1133_p11, %p52_p3  ;;  %p528_p6 = scmp.ge.s32.totalorder %s829_s17, 1 }
  0x33   : > { %p971_p8 = por %p132_p2, %p46_p1  ;;  %p975_p10 = por %p138_p4, %p52_p3 }
  0x34   : > { %s1141_s7 = scalar_select %p963_p5, 1, 0 }
  0x35   : > { %s1142_s28 = scalar_select %p971_p8, 1, 0 }
  0x36   : > { %s1143_s4 = scalar_select %p975_p10, 1, 0 }
  0x37   : > { %p145_p12 = scmp.lt.s32.totalorder %s829_s17, 3  ;;  %s199_s8 = scalar_lea.vmem [#allocation7], %s923_s5 }
  0x38   : > { %s209_s9 = sshll.u32 %s199_s8, 4  ;;  %s834_s11 = smov [#allocation5]   ;;  %s993_s9 = int_to_ptr.vmem [resolvable:$true] %s209_s9 }
  0x39   : > { %p981_p13 = pnand %p528_p6, %p145_p12  ;;  %s160_s19 = sshll.u32 %s834_s11, 4  ;;  %s995_s19 = int_to_ptr.vmem [resolvable:$true] %s160_s19 }
  0x3a   : > { %s555_s20 = sshll.u32 %s825_s16, 9  ;;  %s1145_s2 = sld [smem:[#allocation14_spill]] }
  0x3b   : > { %s1144_s10 = scalar_select %p981_p13, 1, 0 }
  0x3c   : > { %p576_p1 = pneg %p981_p13 }
  0x3e   : > { %p999_p0 = pnand %p576_p1, %p1133_p11 }
  0x40   : > { %s991_s23 = scalar_lea.hbm %s1145_s2, %s555_s20  ;;  %s686_s8 = scalar_lea.hbm %s1145_s2, 1024 }
  0x41   : > { %s681_s25 = scalar_lea.hbm %s991_s23, 512  ;;  %p687_p6 = scmp.lt.u32.totalorder %s991_s23, %s1145_s2 }
  0x42   : > { %p682_p3 = scmp.ne.s32.totalorder %s991_s23, %s681_s25  ;;  %p688_p12 = scmp.lt.u32.totalorder %s686_s8, %s681_s25 }
  0x43   : > { %p690_p1 = scmp.lt.u32.totalorder %s681_s25, %s991_s23 }
  0x44   : > { %p684_p2 = pnand %p682_p3, %p653_p9  ;;  %p689_p10 = por %p688_p12, %p687_p6 }
  0x46   : > { %p685_p4 = pneg %p684_p2  ;;  %p691_p11 = por %p690_p1, %p689_p10 }
  0x48   : > { %p692_p8 = pnand %p691_p11, %p685_p4 }
  0x4a   : > { %695 = shalt.err (!%p692_p8)
}
  0x4b   : > { %s696_s21 = scalar_lea.vmem %s993_s9, 512  ;;  %s835_s22 = smov [#allocation7]  }
  0x4c   : > { %p697_p3 = scmp.ne.s32.totalorder %s993_s9, %s696_s21  ;;  %s701_s26 = sshll.u32 %s835_s22, 4  ;;  %s702_s26 = int_to_ptr.vmem [resolvable:$false] %s701_s26 }
  0x4d   : > { %s703_s30 = scalar_lea.vmem %s702_s26, 1024  ;;  %p704_p13 = scmp.lt.s32.totalorder %s993_s9, %s702_s26 }
  0x4e   : > { %p699_p2 = pnand %p697_p3, %p653_p9  ;;  %p705_p6 = scmp.lt.s32.totalorder %s703_s30, %s696_s21 }
  0x50   : > { %p700_p5 = pneg %p699_p2  ;;  %p706_p12 = por %p705_p6, %p704_p13 }
  0x52   : > { %p707_p10 = pnand %p706_p12, %p700_p5 }
  0x54   : > { %710 = shalt.err (!%p707_p10)
}
  0x55   : > { %s836_s25 = smov 256   ;;  %s837_s8 = smov 16  }
  0x56   : > { %586 = dma.hbm_to_vmem [thread:$0]  (!%p917_p7), %s991_s23, 512, %s993_s9, %s925_s6, %s836_s25, %s836_s25, %s837_s8  }
  0x57   : > { %s711_s22 = scalar_lea.hbm %s1130_s1, 768  ;;  %p713_p11 = pneg %p999_p0 }
  0x58   : > { %p712_p9 = scmp.ne.s32.totalorder %s1130_s1, %s711_s22  ;;  %p718_p13 = scmp.lt.u32.totalorder %s711_s22, %s1130_s1 }
  0x5a   : > { %p714_p5 = pnand %p713_p11, %p712_p9 }
  0x5c   : > { %p715_p8 = pneg %p714_p5 }
  0x5e   : > { %p720_p4 = pnand %p718_p13, %p715_p8 }
  0x60   : > { %723 = shalt.err (!%p720_p4)
}
  0x61   : > { %s724_s29 = scalar_lea.vmem %s995_s19, 768  ;;  %p732_p2 = scmp.lt.s32.totalorder %s995_s19, %s995_s19 }
  0x62   : > { %p725_p7 = scmp.ne.s32.totalorder %s995_s19, %s724_s29  ;;  %p733_p6 = scmp.lt.s32.totalorder %s724_s29, %s724_s29 }
  0x64   : > { %p727_p1 = pnand %p725_p7, %p713_p11  ;;  %p734_p12 = por %p733_p6, %p732_p2 }
  0x66   : > { %p728_p3 = pneg %p727_p1 }
  0x68   : > { %p735_p10 = pnand %p734_p12, %p728_p3 }
  0x6a   : > { %738 = shalt.err (!%p735_p10)
}
  0x6b   : > { %579 = dma.hbm_to_vmem [thread:$0]  (!%p999_p0), %s1130_s1, 768, %s995_s19, [#allocation6], %s836_s25, %s836_s25, %s837_s8  }
  0x6c   : > { %p1147_p9 = scmp.ne.s32.totalorder %s1144_s10, 0 }
  0x6d   : > { %s223_s6 = sand.u32 (!%p1147_p9), 1, %s954_s27   ;;  %s1052_s9 = sand.u32 (!%p1147_p9), 1, %s813_s13  }
  0x6e   : > { %221 = sbr.rel (%p1147_p9) target bundleno = 365 (0x16d), region = 32  ;;  %s539_s23 = sshll.u32 (!%p1147_p9), %s1052_s9, 4 }
  0x6f   : > { %s224_s30 = scalar_lea.sflag (!%p1147_p9), [#allocation3], %s223_s6  ;;  %s227_s11 = scalar_lea.vmem (!%p1147_p9), [#allocation2], %s539_s23 }
  0x70   : > { %p1148_p11 = scmp.ne.s32.totalorder (!%p1147_p9), %s1141_s7, 0 }
  0x75   : > { %792 = dma.done.wait (%p1148_p11), %s224_s30, 256  }
  0x76   : > { %794 = vsyncadd (%p1148_p11), %s224_s30, 4294967040  ;;  %p1149_p0 = scmp.eq.s32.totalorder %s954_s27, 0 }
  0x78   : > { %796 = dma.done.wait (%p1149_p0), [#allocation6], 768   ;;  %p1150_p5 = pmov %p1149_p0 }
  0x79   : > { %s541_s10 = sshll.u32 %s1052_s9, 5 }
  0x7a   : > { %798 = vsyncadd (%p1150_p5), [#allocation6], 4294966528  ;;  %s1064_s19 = scalar_lea.vmem [#allocation7], %s541_s10 }
  0x7b   : > { %800 = dma.done.wait (%p1148_p11), %s224_s30, 512  }
  0x7c   : > { %802 = vsyncadd (%p1148_p11), %s224_s30, 4294966784  ;;  %v838_v0 = vmov 0.0   ;;  %v277_v1 = vld [vmem:[#allocation5 + $0x8] sm:$0xff]  ;;  %v279_v2 = vld [vmem:[#allocation5 + $0x18] sm:$0xff]  ;;  %vm289_vm0 = vcmask 1041408   ;;  %vm282_vm1 = vcmask 146432  }
  0x7d   : > { %360 = vmatprep.mubr.f32.mxu0 %v838_v0  ;;  %366 = vmatprep.mubr.f32.mxu1 %v838_v0  ;;  %v276_v3 = vld [vmem:[#allocation5] sm:$0xff]  ;;  %v558_v4 = vpack.c.bf16 %v279_v2, %v277_v1  ;;  %v278_v5 = vld [vmem:[#allocation5 + $0x10] sm:$0xff]  ;;  %v281_v7 = vld [vmem:[#allocation5 + $0x28] sm:$0x3]  ;;  %s267_s27 = scalar_lea.vmem [#allocation8], %s541_s10  ;;  %s557_s5 = sshll.u32 %s821_s15, 9 }
  0x7e   : > { %v560_v6 = vpack.c.bf16 %v278_v5, %v276_v3  ;;  %v280_v8 = vld [vmem:[#allocation5 + $0x20] sm:$0x3]  ;;  %v275_v10 = vld [vmem:[%s227_s11 + $0x8] sm:$0xff]  ;;  %s407_s7 = sshll.u32 %s267_s27, 4  ;;  %v373_v12 = vld [vmem:[%s1064_s19] sm:$0xff]  ;;  %vm386_vm2 = vcmask 130048   ;;  %s1080_s15 = scalar_lea.hbm %s1132_s3, %s557_s5  ;;  %s1075_s7 = int_to_ptr.vmem [resolvable:$true] %s407_s7 }
  0x7f   : > { %559 = vmatprep.subr.bf16.mxu0 %v558_v4  ;;  %562 = vmatprep.subr.bf16.mxu1 %v558_v4  ;;  %v274_v9 = vld [vmem:[%s227_s11] sm:$0xff]  ;;  %v374_v18 = vld [vmem:[%s1064_s19 + $0x8] sm:$0xff]  ;;  %v376_v20 = vld [vmem:[%s1064_s19 + $0x18] sm:$0xff]  ;;  %s391_s20 = scalar_lea.sflag [#allocation4], %s1052_s9  ;;  %s739_s22 = scalar_lea.vmem %s1075_s7, 512 }
  0x80   : > { %561 = vmatpush1.bf16.msra.mxu0 %v560_v6  ;;  %564 = vmatpush1.bf16.msra.mxu1 %v560_v6  ;;  %v375_v14 = vld [vmem:[%s1064_s19 + $0x10] sm:$0xff]  ;;  %p740_p8 = scmp.ne.s32.totalorder %s1075_s7, %s739_s22  ;;  %p1151_p13 = scmp.ne.s32.totalorder %s1142_s28, 0 }
  0x81   : > { %543 = vmatprep.subr.msk.mxu0 %vm289_vm0, %v281_v7  ;;  %563 = vmatprep.subr.msk.mxu1 %vm289_vm0, %v281_v7  ;;  %s839_s21 = smov [#allocation8]  }
  0x82   : > { %p741_p4 = pnand %p740_p8, %p1151_p13  ;;  %s743_s26 = sshll.u32 %s839_s21, 4  ;;  %s744_s26 = int_to_ptr.vmem [resolvable:$false] %s743_s26 }
  0x83   : > { %s745_s29 = scalar_lea.vmem %s744_s26, 1024  ;;  %p746_p1 = scmp.lt.s32.totalorder %s1075_s7, %s744_s26 }
  0x84   : > { %544 = vmatpush1.msk.msra.mxu0 %vm289_vm0, %v280_v8  ;;  %565 = vmatpush1.msk.msra.mxu1 %vm289_vm0, %v280_v8  ;;  %p742_p7 = pneg %p741_p4  ;;  %p747_p3 = scmp.lt.s32.totalorder %s745_s29, %s739_s22 }
  0x85   : > { %545 = vmatmul.mubr.msk.f32.vlgmr.msra.gmra.mrb[0].mxu0 %vm282_vm1, %v274_v9  ;;  %546 = vmatmul.mubr.msk.f32.vlgmr.msra.gmra.mrb[0].mxu1 %vm282_vm1, %v275_v10 }
  0x86   : > { %p748_p2 = por %p747_p3, %p746_p1 }
  0x88   : > { %p749_p6 = pnand %p748_p2, %p742_p7 }
 0x158   : > { %v362_v11 = vpop.f32.mrb[0].mxu0  ;;  %v368_v13 = vpop.f32.mrb[0].mxu1 }
 0x159   : > { %v377_v15 = vmul.f32 2.0, %v362_v11  ;;  %v379_v16 = vmul.f32 2.0, %v368_v13  ;;  %v364_v17 = vpop.f32.mrb[1].mxu0  ;;  %v370_v19 = vpop.f32.mrb[1].mxu1 }
 0x15a   : > { %v378_v21 = vmul.f32 2.0, %v364_v17  ;;  %v380_v22 = vmul.f32 2.0, %v370_v19 }
 0x15b   : > { %v381_v23 = vadd.f32 %v377_v15, %v373_v12  ;;  %v383_v24 = vadd.f32 %v379_v16, %v375_v14 }
 0x15c   : > { %v382_v25 = vadd.f32 %v378_v21, %v374_v18  ;;  %v384_v26 = vadd.f32 %v380_v22, %v376_v20 }
 0x15d   : > { %385 = vst [vmem:[%s267_s27] sm:$0xff] %v381_v23  ;;  %388 = vst [vmem:[%s267_s27 + $0x10] sm:$0xff] %v383_v24 }
 0x15e   : > { %387 = vst.msk [vmem:[%s267_s27 + $0x8] sm:$0xff] %vm386_vm2, %v382_v25  ;;  %389 = vst.msk [vmem:[%s267_s27 + $0x18] sm:$0xff] %vm386_vm2, %v384_v26 }
 0x15f   : > { %752 = shalt.err (!%p749_p6)
}
 0x160   : > { %s753_s0 = scalar_lea.hbm %s1080_s15, 512  ;;  %s757_s23 = scalar_lea.hbm %s1132_s3, 1024 }
 0x161   : > { %p754_p12 = scmp.ne.s32.totalorder %s1080_s15, %s753_s0  ;;  %p758_p11 = scmp.lt.u32.totalorder %s1080_s15, %s1132_s3 }
 0x162   : > { %p759_p0 = scmp.lt.u32.totalorder %s757_s23, %s753_s0  ;;  %p761_p8 = scmp.lt.u32.totalorder %s753_s0, %s1080_s15 }
 0x163   : > { %p755_p10 = pnand %p754_p12, %p1151_p13 }
 0x164   : > { %p760_p5 = por %p759_p0, %p758_p11 }
 0x165   : > { %p756_p9 = pneg %p755_p10 }
 0x166   : > { %p762_p4 = por %p761_p8, %p760_p5 }
 0x168   : > { %p763_p7 = pnand %p762_p4, %p756_p9 }
 0x16a   : > { %766 = shalt.err (!%p763_p7)
}
 0x16b   : > { %s840_s10 = smov 256   ;;  %s841_s19 = smov 16  }
 0x16c   : > { %574 = dma.vmem_to_hbm [thread:$0]  (%p1151_p13), %s1075_s7, 512, %s1080_s15, %s391_s20, %s840_s10, %s840_s10, %s841_s19  }
 0x16d PF: > { %s422_s27 = sand.u32 1, %s809_s12   ;;  %p1152_p1 = scmp.ne.s32.totalorder %s1143_s4, 0 }
 0x16e   : > { %p1153_p3 = scmp.ge.s32.totalorder %s829_s17, 2  ;;  %s423_s5 = scalar_lea.sflag [#allocation4], %s422_s27 }
 0x170   : > { %p588_p2 = pnand %p1153_p3, %p1152_p1 }
 0x172   : > { %804 = dma.done.wait (!%p588_p2), %s423_s5, 512  }
 0x173   : > { %806 = vsyncadd (!%p588_p2), %s423_s5, 4294966784  ;;  %s20_s17 = sadd.s32 1, %s829_s17   ;;  %s1154_s12 = smov %s813_s13 }
 0x174   : > { %p17_p6 = scmp.ge.s32.totalorder %s20_s17, 4   ;;  %s1155_s13 = smov %s817_s14 }
 0x175   : > { %s1156_s14 = smov %s910_s24  ;;  %s1157_s15 = smov %s825_s16 }
 0x176   : > { %s1158_s16 = smov %s1160_s18  ;;  %19 = sbr.rel (!%p17_p6) target bundleno = 10 (0xa), region = 93 }
 0x17d   :  { %428 = vsyncpa [#allocation3], 1 }
 0x17e   :  { %430 = vsyncpa [#allocation3 + $0x1], 1 }
 0x17f   :  { %431 = vsyncpa [#allocation6], 1 }
 0x180   :  { %432 = vsyncpa [#allocation4], 1 }
 0x181   :  { %434 = vsyncpa [#allocation4 + $0x1], 1 }

</bundles_post_ra>
